<compile_context>
chip_gen: v6e
topology: v6e:2x2x1
jax: 0.10.0
libtpu: 0.0.40
codegen_flags: <defaults>
</compile_context>

<pallas_src>
import functools
import math

import jax
import jax.numpy as jnp
from jax.experimental import pallas as pl
from jax.experimental.pallas import tpu as pltpu


def _round_up(x, m):
    return ((x + m - 1) // m) * m


def _nbytes(shape, dtype):
    return math.prod(shape) * jnp.dtype(dtype).itemsize


def _vmem_limit(block_bytes):
    """Explicit scoped-VMEM limit: double-buffered blocks + headroom."""
    need = 2 * block_bytes + (4 << 20)
    return int(min(max(need, 16 << 20), 64 << 20))


# ----------------------------------------------------------------------------
# Pallas kernels
# ----------------------------------------------------------------------------
def _mha_block_kernel(xq_ref, xkv_ref, wq_ref, wkv_ref, bq_ref, bkv_ref,
                      wo_ref, bo_ref, g_ref, beta_ref,
                      y_ref, attn_ref, *, n_heads, scale, eps, causal, q_tile):
    """Fused MHA block for one (batch, query-tile) grid step.

    y = LayerNorm(x_q + MHA(x_q, x_kv) @ Wo + bo); also emits per-head
    attention probabilities (bf16).  Matmuls: bf16 in, f32 accumulate.
    """
    f32 = jnp.float32
    bf16 = jnp.bfloat16

    xq = xq_ref[0]                                   # (tq, D) f32
    xkv = xkv_ref[0]                                 # (Lk, D) f32
    D = xq.shape[-1]
    Lk = xkv.shape[0]
    tq = xq.shape[0]
    H = n_heads
    Dh = D // H

    # ---- fused projections (Q and concatenated K|V) ---------------------
    q = jnp.dot(xq.astype(bf16), wq_ref[...],
                preferred_element_type=f32) + bq_ref[...]        # (tq, D)
    q = q * scale                                    # fold 1/sqrt(Dh) into q
    kv = jnp.dot(xkv.astype(bf16), wkv_ref[...],
                 preferred_element_type=f32) + bkv_ref[...]      # (Lk, 2D)
    k = kv[:, :D]
    v = kv[:, D:]

    qb = q.astype(bf16)
    kb = k.astype(bf16)
    vb = v.astype(bf16)

    # ---- causal mask generated in-kernel (no HBM mask tensor) ------------
    if causal:
        q_off = pl.program_id(1) * q_tile
        rows = jax.lax.broadcasted_iota(jnp.int32, (tq, Lk), 0) + q_off
        cols = jax.lax.broadcasted_iota(jnp.int32, (tq, Lk), 1)
        keep = cols <= rows

    # ---- per-head attention; contexts concatenated, ONE Wo matmul --------
    ctx_parts = []
    for h in range(H):                               # static unrolled loop
        lo = h * Dh
        qh = qb[:, lo:lo + Dh]                       # (tq, Dh)
        kh = kb[:, lo:lo + Dh]                       # (Lk, Dh)
        vh = vb[:, lo:lo + Dh]                       # (Lk, Dh)

        s = jax.lax.dot_general(qh, kh, (((1,), (1,)), ((), ())),
                                preferred_element_type=f32)      # (tq, Lk)
        if causal:
            s = jnp.where(keep, s, jnp.float32(-1e9))
        m = jnp.max(s, axis=-1, keepdims=True)
        p = jnp.exp(s - m)
        a = p / jnp.sum(p, axis=-1, keepdims=True)   # exact softmax
        attn_ref[0, h] = a.astype(attn_ref.dtype)    # bf16 diagnostics

        ctx_parts.append(jnp.dot(a.astype(bf16), vh,
                                 preferred_element_type=f32))    # (tq, Dh)
    ctx = jnp.concatenate(ctx_parts, axis=-1)        # (tq, D)
    out = jnp.dot(ctx.astype(bf16), wo_ref[...],
                  preferred_element_type=f32) + bo_ref[...]      # (tq, D)

    # ---- residual + LayerNorm epilogue (f32) ------------------------------
    # TODO(synk): dropout in the reference DecoderLayer is an inference no-op.
    r = xq + out
    mean = jnp.mean(r, axis=-1, keepdims=True)
    var = jnp.mean((r - mean) ** 2, axis=-1, keepdims=True)
    y_ref[0] = (r - mean) * jax.lax.rsqrt(var + eps) * g_ref[...] + beta_ref[...]


def _ffn_ln_kernel(x_ref, w1_ref, b1_ref, w2_ref, b2_ref, g_ref, beta_ref,
                   y_ref, *, eps):
    """y = LayerNorm(x + relu(x @ W1 + b1) @ W2 + b2) for one row tile."""
    f32 = jnp.float32
    bf16 = jnp.bfloat16
    x = x_ref[...]                                   # (T, D) f32
    h = jnp.dot(x.astype(bf16), w1_ref[...],
                preferred_element_type=f32) + b1_ref[...]
    h = jnp.maximum(h, 0.0)
    f = jnp.dot(h.astype(bf16), w2_ref[...],
                preferred_element_type=f32) + b2_ref[...]
    r = x + f
    mean = jnp.mean(r, axis=-1, keepdims=True)
    var = jnp.mean((r - mean) ** 2, axis=-1, keepdims=True)
    y_ref[...] = (r - mean) * jax.lax.rsqrt(var + eps) * g_ref[...] + beta_ref[...]


def _norm_proj_kernel(x_ref, g_ref, beta_ref, w_ref, b_ref, y_ref, *, eps):
    """y = LayerNorm(x) @ Wproj + bproj for one row tile (lane-dense output)."""
    f32 = jnp.float32
    x = x_ref[...]
    mean = jnp.mean(x, axis=-1, keepdims=True)
    var = jnp.mean((x - mean) ** 2, axis=-1, keepdims=True)
    xn = (x - mean) * jax.lax.rsqrt(var + eps) * g_ref[...] + beta_ref[...]
    y_ref[...] = jnp.dot(xn.astype(jnp.bfloat16), w_ref[...],
                         preferred_element_type=f32) + b_ref[...]


# ----------------------------------------------------------------------------
# Pallas wrappers
# ----------------------------------------------------------------------------
def mha_block(x_q, x_kv, ap, ln_g, ln_b, *, causal, eps=1e-5, q_tile=128,
              attn_dtype=jnp.bfloat16):
    """Fused attention block; grid = (batch, query tiles), both parallel."""
    B, Lq, D = x_q.shape
    Lk = x_kv.shape[1]
    H = ap["n_heads"]
    Dh = D // H
    tq = min(q_tile, _round_up(Lq, 8))
    nq = pl.cdiv(Lq, tq)

    block_bytes = (
        _nbytes((tq, D), jnp.float32) + _nbytes((Lk, D), jnp.float32)
        + 2 * _nbytes((D, D), jnp.bfloat16) + _nbytes((D, 2 * D), jnp.bfloat16)
        + _nbytes((tq, D), jnp.float32) + _nbytes((H, tq, Lk), attn_dtype)
        + 6 * _nbytes((1, 2 * D), jnp.float32))

    kern = functools.partial(_mha_block_kernel, n_heads=H,
                             scale=1.0 / float(Dh) ** 0.5, eps=eps,
                             causal=causal, q_tile=tq)
    y, attn = pl.pallas_call(
        kern,
        grid=(B, nq),
        in_specs=[
            pl.BlockSpec((1, tq, D), lambda b, qi: (b, qi, 0)),   # x_q tile
            pl.BlockSpec((1, Lk, D), lambda b, qi: (b, 0, 0)),    # x_kv (per-b)
            pl.BlockSpec((D, D), lambda b, qi: (0, 0)),           # Wq (resident)
            pl.BlockSpec((D, 2 * D), lambda b, qi: (0, 0)),       # Wkv
            pl.BlockSpec((1, D), lambda b, qi: (0, 0)),           # bq
            pl.BlockSpec((1, 2 * D), lambda b, qi: (0, 0)),       # bkv
            pl.BlockSpec((D, D), lambda b, qi: (0, 0)),           # Wo
            pl.BlockSpec((1, D), lambda b, qi: (0, 0)),           # bo
            pl.BlockSpec((1, D), lambda b, qi: (0, 0)),           # LN gamma
            pl.BlockSpec((1, D), lambda b, qi: (0, 0)),           # LN beta
        ],
        out_specs=(
            pl.BlockSpec((1, tq, D), lambda b, qi: (b, qi, 0)),
            pl.BlockSpec((1, H, tq, Lk), lambda b, qi: (b, 0, qi, 0)),
        ),
        out_shape=(
            jax.ShapeDtypeStruct((B, Lq, D), jnp.float32),
            jax.ShapeDtypeStruct((B, H, Lq, Lk), attn_dtype),
        ),
        compiler_params=pltpu.CompilerParams(
            dimension_semantics=("parallel", "parallel"),
            vmem_limit_bytes=_vmem_limit(block_bytes)),
    )(x_q, x_kv, ap["wq"], ap["wkv"], ap["bq"], ap["bkv"],
      ap["wo"], ap["bo"], ln_g, ln_b)
    return y, attn


def ffn_ln(x2d, w1, b1, w2, b2, g, beta, eps=1e-5, row_tile=256):
    """Fused FFN + residual + LayerNorm over row-tiled grid."""
    n, d = x2d.shape
    dff = w1.shape[1]
    t = min(row_tile, _round_up(n, 8))
    block_bytes = (2 * _nbytes((t, d), jnp.float32)
                   + _nbytes((d, dff), jnp.bfloat16)
                   + _nbytes((dff, d), jnp.bfloat16)
                   + _nbytes((t, dff), jnp.float32)
                   + 4 * _nbytes((1, dff), jnp.float32))
    # TODO(synk): for very large d_ff on v7x/v5e also tile the d_ff contraction
    # and single-buffer the weights; not needed at these shapes.
    return pl.pallas_call(
        functools.partial(_ffn_ln_kernel, eps=eps),
        grid=(pl.cdiv(n, t),),
        in_specs=[
            pl.BlockSpec((t, d), lambda i: (i, 0)),
            pl.BlockSpec((d, dff), lambda i: (0, 0)),
            pl.BlockSpec((1, dff), lambda i: (0, 0)),
            pl.BlockSpec((dff, d), lambda i: (0, 0)),
            pl.BlockSpec((1, d), lambda i: (0, 0)),
            pl.BlockSpec((1, d), lambda i: (0, 0)),
            pl.BlockSpec((1, d), lambda i: (0, 0)),
        ],
        out_specs=pl.BlockSpec((t, d), lambda i: (i, 0)),
        out_shape=jax.ShapeDtypeStruct((n, d), jnp.float32),
        compiler_params=pltpu.CompilerParams(
            dimension_semantics=("parallel",),
            vmem_limit_bytes=_vmem_limit(block_bytes)),
    )(x2d, w1, b1, w2, b2, g, beta)


def norm_proj(x2d, g, beta, w_pad, b_pad, c_out, eps=1e-5, row_tile=512):
    """Fused final LayerNorm + projection; output slab is lane-dense (c padded
    to a multiple of 128), sliced back to c_out outside the kernel."""
    n, d = x2d.shape
    cpad = w_pad.shape[1]
    t = min(row_tile, _round_up(n, 8))
    block_bytes = (_nbytes((t, d), jnp.float32) + _nbytes((d, cpad), jnp.bfloat16)
                   + _nbytes((t, cpad), jnp.float32)
                   + 3 * _nbytes((1, max(d, cpad)), jnp.float32))
    y = pl.pallas_call(
        functools.partial(_norm_proj_kernel, eps=eps),
        grid=(pl.cdiv(n, t),),
        in_specs=[
            pl.BlockSpec((t, d), lambda i: (i, 0)),
            pl.BlockSpec((1, d), lambda i: (0, 0)),
            pl.BlockSpec((1, d), lambda i: (0, 0)),
            pl.BlockSpec((d, cpad), lambda i: (0, 0)),
            pl.BlockSpec((1, cpad), lambda i: (0, 0)),
        ],
        out_specs=pl.BlockSpec((t, cpad), lambda i: (i, 0)),
        out_shape=jax.ShapeDtypeStruct((n, cpad), jnp.float32),
        compiler_params=pltpu.CompilerParams(
            dimension_semantics=("parallel",),
            vmem_limit_bytes=_vmem_limit(block_bytes)),
    )(x2d, g, beta, w_pad, b_pad)
    return y[:, :c_out]


# ----------------------------------------------------------------------------
# Decoder model (glue in plain JAX, compute in fused Pallas kernels)
# ----------------------------------------------------------------------------
def decoder_layer(x, cross, p):
    B, L, D = x.shape
    # self-attention (causal mask generated in-kernel) + residual + norm
    x, attn = mha_block(x, x, p["self_attn"], p["norm1_g"], p["norm1_b"],
                        causal=True)
    # cross-attention (no mask) + residual + norm
    x, cross_attn = mha_block(x, cross, p["cross_attn"], p["norm2_g"],
                              p["norm2_b"], causal=False)
    # position-wise feed-forward + residual + norm
    x = ffn_ln(x.reshape(B * L, D), p["w1"], p["b1"], p["w2"], p["b2"],
               p["norm3_g"], p["norm3_b"]).reshape(B, L, D)
    return x, attn, cross_attn


def decoder_forward(x, cross, params):
    """Mirrors Decoder.forward: loop layers, collect attns, norm, project.

    TODO(synk): arbitrary user-supplied x_mask / cross_mask tensors are not
    plumbed through; the standard causal self-mask / no cross-mask case is
    generated in-kernel instead.
    """
    B, L, D = x.shape
    attns, cross_attns = [], []
    for lp in params["layers"]:
        x, a, ca = decoder_layer(x, cross, lp)
        attns.append(a)
        cross_attns.append(ca)
    # final norm_layer + projection (fused, lane-dense output slab)
    x = norm_proj(x.reshape(B * L, D), params["norm_g"], params["norm_b"],
                  params["proj_w"], params["proj_b"],
                  params["c_out"]).reshape(B, L, params["c_out"])
    return x, attns, cross_attns


# ----------------------------------------------------------------------------
# Deterministic parameter construction (kernel-ready: bf16 weights, fused K|V,
# padded projection — all one-time prep, no per-forward XLA cast/concat).
# ----------------------------------------------------------------------------
def _init_attn_params(key, d_model, n_heads):
    ks = jax.random.split(key, 4)
    scale = 0.02
    wq = scale * jax.random.normal(ks[0], (d_model, d_model), jnp.float32)
    wk = scale * jax.random.normal(ks[1], (d_model, d_model), jnp.float32)
    wv = scale * jax.random.normal(ks[2], (d_model, d_model), jnp.float32)
    wo = scale * jax.random.normal(ks[3], (d_model, d_model), jnp.float32)
    return {
        "n_heads": n_heads,
        "wq": wq.astype(jnp.bfloat16),
        "wkv": jnp.concatenate([wk, wv], axis=1).astype(jnp.bfloat16),
        "wo": wo.astype(jnp.bfloat16),
        "bq": jnp.zeros((1, d_model), jnp.float32),
        "bkv": jnp.zeros((1, 2 * d_model), jnp.float32),
        "bo": jnp.zeros((1, d_model), jnp.float32),
    }


def init_decoder_params(key, num_layers, d_model, n_heads, d_ff, c_out):
    params = {"layers": []}
    keys = jax.random.split(key, num_layers + 1)
    scale = 0.02
    for i in range(num_layers):
        k_sa, k_ca, k_f1, k_f2 = jax.random.split(keys[i], 4)
        layer = {
            "self_attn": _init_attn_params(k_sa, d_model, n_heads),
            "cross_attn": _init_attn_params(k_ca, d_model, n_heads),
            "w1": (scale * jax.random.normal(k_f1, (d_model, d_ff),
                                             jnp.float32)).astype(jnp.bfloat16),
            "b1": jnp.zeros((1, d_ff), jnp.float32),
            "w2": (scale * jax.random.normal(k_f2, (d_ff, d_model),
                                             jnp.float32)).astype(jnp.bfloat16),
            "b2": jnp.zeros((1, d_model), jnp.float32),
            "norm1_g": jnp.ones((1, d_model), jnp.float32),
            "norm1_b": jnp.zeros((1, d_model), jnp.float32),
            "norm2_g": jnp.ones((1, d_model), jnp.float32),
            "norm2_b": jnp.zeros((1, d_model), jnp.float32),
            "norm3_g": jnp.ones((1, d_model), jnp.float32),
            "norm3_b": jnp.zeros((1, d_model), jnp.float32),
        }
        params["layers"].append(layer)
    kp = keys[-1]
    proj_w = scale * jax.random.normal(kp, (d_model, c_out), jnp.float32)
    proj_b = jnp.zeros((c_out,), jnp.float32)
    cpad = _round_up(c_out, 128)                     # lane-dense output slab
    params["norm_g"] = jnp.ones((1, d_model), jnp.float32)
    params["norm_b"] = jnp.zeros((1, d_model), jnp.float32)
    params["proj_w"] = jnp.pad(proj_w, ((0, 0), (0, cpad - c_out))).astype(
        jnp.bfloat16)
    params["proj_b"] = jnp.pad(proj_b, (0, cpad - c_out)).reshape(1, cpad)
    params["c_out"] = c_out
    return params


# ----------------------------------------------------------------------------
if __name__ == "__main__":
    B, L_DEC, L_ENC = 2, 8, 16
    D_MODEL, N_HEADS, D_FF, C_OUT = 32, 4, 64, 4
    NUM_LAYERS = 2

    key = jax.random.PRNGKey(0)
    kx, kc, kp = jax.random.split(key, 3)
    x = jax.random.normal(kx, (B, L_DEC, D_MODEL), jnp.float32)
    cross = jax.random.normal(kc, (B, L_ENC, D_MODEL), jnp.float32)

    params = init_decoder_params(kp, NUM_LAYERS, D_MODEL, N_HEADS, D_FF, C_OUT)

    out, attns, cross_attns = decoder_forward(x, cross, params)
    out = jax.block_until_ready(out)
    for a in attns + cross_attns:
        jax.block_until_ready(a)

    assert out.shape == (B, L_DEC, C_OUT)
    assert len(attns) == NUM_LAYERS and len(cross_attns) == NUM_LAYERS
    assert attns[0].shape == (B, N_HEADS, L_DEC, L_DEC)
    assert cross_attns[0].shape == (B, N_HEADS, L_DEC, L_ENC)
    assert bool(jnp.all(jnp.isfinite(out)))
    for a in attns + cross_attns:
        assert bool(jnp.all(jnp.isfinite(a.astype(jnp.float32))))
        # attention rows sum to ~1 (exact softmax, bf16 storage)
        assert bool(jnp.all(jnp.abs(
            jnp.sum(a.astype(jnp.float32), axis=-1) - 1.0) < 2e-2))
    print("KERNEL_OK")
</pallas_src>

<mosaic_0001>
module attributes {stable_mosaic.version = 11 : i64} {
  func.func @_mha_block_kernel(%arg0: i32, %arg1: i32, %arg2: memref<1x8x32xf32, #tpu.memory_space<vmem>>, %arg3: memref<1x8x32xf32, #tpu.memory_space<vmem>>, %arg4: memref<32x32xbf16, #tpu.memory_space<vmem>>, %arg5: memref<32x64xbf16, #tpu.memory_space<vmem>>, %arg6: memref<1x32xf32, #tpu.memory_space<vmem>>, %arg7: memref<1x64xf32, #tpu.memory_space<vmem>>, %arg8: memref<32x32xbf16, #tpu.memory_space<vmem>>, %arg9: memref<1x32xf32, #tpu.memory_space<vmem>>, %arg10: memref<1x32xf32, #tpu.memory_space<vmem>>, %arg11: memref<1x32xf32, #tpu.memory_space<vmem>>, %arg12: memref<1x8x32xf32, #tpu.memory_space<vmem>>, %arg13: memref<1x4x8x8xbf16, #tpu.memory_space<vmem>>) attributes {dimension_semantics = [#tpu.dimension_semantics<parallel>, #tpu.dimension_semantics<parallel>], iteration_bounds = array<i64: 2, 1>, scalar_prefetch = 0 : i64, scratch_operands = 0 : i64, tpu.core_type = #tpu.core_type<tc>, window_params = [{transform_indices = @transform_0, window_bounds = array<i64: 1, 8, 32>}, {transform_indices = @transform_1, window_bounds = array<i64: 1, 8, 32>}, {pipeline_mode = #tpu.pipeline_mode<synchronous>, transform_indices = @transform_2, window_bounds = array<i64: 32, 32>}, {pipeline_mode = #tpu.pipeline_mode<synchronous>, transform_indices = @transform_3, window_bounds = array<i64: 32, 64>}, {pipeline_mode = #tpu.pipeline_mode<synchronous>, transform_indices = @transform_4, window_bounds = array<i64: 1, 32>}, {pipeline_mode = #tpu.pipeline_mode<synchronous>, transform_indices = @transform_5, window_bounds = array<i64: 1, 64>}, {pipeline_mode = #tpu.pipeline_mode<synchronous>, transform_indices = @transform_6, window_bounds = array<i64: 32, 32>}, {pipeline_mode = #tpu.pipeline_mode<synchronous>, transform_indices = @transform_7, window_bounds = array<i64: 1, 32>}, {pipeline_mode = #tpu.pipeline_mode<synchronous>, transform_indices = @transform_8, window_bounds = array<i64: 1, 32>}, {pipeline_mode = #tpu.pipeline_mode<synchronous>, transform_indices = @transform_9, window_bounds = array<i64: 1, 32>}, {transform_indices = @transform_10, window_bounds = array<i64: 1, 8, 32>}, {transform_indices = @transform_11, window_bounds = array<i64: 1, 4, 8, 8>}]} {
    %c0 = arith.constant 0 : index
    %c0_0 = arith.constant 0 : index
    %c0_1 = arith.constant 0 : index
    %0 = vector.load %arg2[%c0, %c0_0, %c0_1] : memref<1x8x32xf32, #tpu.memory_space<vmem>>, vector<1x8x32xf32>
    %1 = vector.shape_cast %0 : vector<1x8x32xf32> to vector<8x32xf32>
    %c0_2 = arith.constant 0 : index
    %c0_3 = arith.constant 0 : index
    %c0_4 = arith.constant 0 : index
    %2 = vector.load %arg3[%c0_2, %c0_3, %c0_4] : memref<1x8x32xf32, #tpu.memory_space<vmem>>, vector<1x8x32xf32>
    %3 = vector.shape_cast %2 : vector<1x8x32xf32> to vector<8x32xf32>
    %4 = arith.truncf %1 : vector<8x32xf32> to vector<8x32xbf16>
    %c0_5 = arith.constant 0 : index
    %c0_6 = arith.constant 0 : index
    %5 = vector.load %arg4[%c0_5, %c0_6] : memref<32x32xbf16, #tpu.memory_space<vmem>>, vector<32x32xbf16>
    %cst = arith.constant dense<0.000000e+00> : vector<8x32xf32>
    %6 = tpu.matmul %4, %5, %cst {dimension_numbers = #tpu.dot_dimension_numbers<[1], [0], [0], [1], [0, 0, 1, 1], [], []>} : vector<8x32xbf16>, vector<32x32xbf16>, vector<8x32xf32> -> vector<8x32xf32>
    %c0_7 = arith.constant 0 : index
    %c0_8 = arith.constant 0 : index
    %7 = vector.load %arg6[%c0_7, %c0_8] : memref<1x32xf32, #tpu.memory_space<vmem>>, vector<1x32xf32>
    %8 = vector.broadcast %7 : vector<1x32xf32> to vector<8x32xf32>
    %9 = arith.addf %6, %8 : vector<8x32xf32>
    %cst_9 = arith.constant 0.353553385 : f32
    %10 = vector.broadcast %cst_9 : f32 to vector<8x32xf32>
    %11 = arith.mulf %9, %10 : vector<8x32xf32>
    %12 = arith.truncf %3 : vector<8x32xf32> to vector<8x32xbf16>
    %c0_10 = arith.constant 0 : index
    %c0_11 = arith.constant 0 : index
    %13 = vector.load %arg5[%c0_10, %c0_11] : memref<32x64xbf16, #tpu.memory_space<vmem>>, vector<32x64xbf16>
    %cst_12 = arith.constant dense<0.000000e+00> : vector<8x64xf32>
    %14 = tpu.matmul %12, %13, %cst_12 {dimension_numbers = #tpu.dot_dimension_numbers<[1], [0], [0], [1], [0, 0, 1, 1], [], []>} : vector<8x32xbf16>, vector<32x64xbf16>, vector<8x64xf32> -> vector<8x64xf32>
    %c0_13 = arith.constant 0 : index
    %c0_14 = arith.constant 0 : index
    %15 = vector.load %arg7[%c0_13, %c0_14] : memref<1x64xf32, #tpu.memory_space<vmem>>, vector<1x64xf32>
    %16 = vector.broadcast %15 : vector<1x64xf32> to vector<8x64xf32>
    %17 = arith.addf %14, %16 : vector<8x64xf32>
    %18 = vector.extract_strided_slice %17 {offsets = [0, 0], sizes = [8, 32], strides = [1, 1]} : vector<8x64xf32> to vector<8x32xf32>
    %19 = vector.extract_strided_slice %17 {offsets = [0, 32], sizes = [8, 32], strides = [1, 1]} : vector<8x64xf32> to vector<8x32xf32>
    %20 = arith.truncf %11 : vector<8x32xf32> to vector<8x32xbf16>
    %21 = arith.truncf %18 : vector<8x32xf32> to vector<8x32xbf16>
    %22 = arith.truncf %19 : vector<8x32xf32> to vector<8x32xbf16>
    %c8_i32 = arith.constant 8 : i32
    %23 = arith.muli %arg1, %c8_i32 : i32
    %24 = tpu.iota {dimensions = array<i32: 0>} : vector<8x8xi32>
    %25 = vector.broadcast %23 : i32 to vector<8x8xi32>
    %26 = arith.addi %24, %25 : vector<8x8xi32>
    %27 = tpu.iota {dimensions = array<i32: 1>} : vector<8x8xi32>
    %28 = arith.cmpi sle, %27, %26 : vector<8x8xi32>
    %29 = vector.extract_strided_slice %20 {offsets = [0, 0], sizes = [8, 8], strides = [1, 1]} : vector<8x32xbf16> to vector<8x8xbf16>
    %30 = vector.extract_strided_slice %21 {offsets = [0, 0], sizes = [8, 8], strides = [1, 1]} : vector<8x32xbf16> to vector<8x8xbf16>
    %31 = vector.extract_strided_slice %22 {offsets = [0, 0], sizes = [8, 8], strides = [1, 1]} : vector<8x32xbf16> to vector<8x8xbf16>
    %cst_15 = arith.constant dense<0.000000e+00> : vector<8x8xf32>
    %32 = tpu.matmul %29, %30, %cst_15 {dimension_numbers = #tpu.dot_dimension_numbers<[1], [1], [0], [0], [0, 0, 1, 0], [], []>} : vector<8x8xbf16>, vector<8x8xbf16>, vector<8x8xf32> -> vector<8x8xf32>
    %cst_16 = arith.constant -1.000000e+09 : f32
    %33 = vector.broadcast %cst_16 : f32 to vector<8x8xf32>
    %34 = arith.select %28, %32, %33 : vector<8x8xi1>, vector<8x8xf32>
    %cst_17 = arith.constant dense<0xFF800000> : vector<8xf32>
    %35 = vector.multi_reduction <maximumf>, %34, %cst_17 [1] : vector<8x8xf32> to vector<8xf32>
    %36 = vector.shape_cast %35 : vector<8xf32> to vector<8x1xf32>
    %37 = vector.broadcast %36 : vector<8x1xf32> to vector<8x8xf32>
    %38 = arith.subf %34, %37 : vector<8x8xf32>
    %39 = math.exp %38 : vector<8x8xf32>
    %cst_18 = arith.constant dense<0.000000e+00> : vector<8xf32>
    %40 = vector.multi_reduction <add>, %39, %cst_18 [1] : vector<8x8xf32> to vector<8xf32>
    %41 = vector.shape_cast %40 : vector<8xf32> to vector<8x1xf32>
    %42 = vector.broadcast %41 : vector<8x1xf32> to vector<8x8xf32>
    %43 = arith.divf %39, %42 : vector<8x8xf32>
    %44 = arith.truncf %43 : vector<8x8xf32> to vector<8x8xbf16>
    %c0_19 = arith.constant 0 : index
    %c0_20 = arith.constant 0 : index
    %c0_21 = arith.constant 0 : index
    %c0_22 = arith.constant 0 : index
    %45 = vector.load %arg13[%c0_19, %c0_20, %c0_21, %c0_22] : memref<1x4x8x8xbf16, #tpu.memory_space<vmem>>, vector<1x1x8x8xbf16>
    %46 = vector.shape_cast %45 : vector<1x1x8x8xbf16> to vector<8x8xbf16>
    %47 = vector.shape_cast %44 : vector<8x8xbf16> to vector<1x1x8x8xbf16>
    tpu.vector_store %arg13[%c0_19, %c0_20, %c0_21, %c0_22], %47 {strides = array<i32>} : memref<1x4x8x8xbf16, #tpu.memory_space<vmem>>, vector<1x1x8x8xbf16>,
    %48 = arith.truncf %43 : vector<8x8xf32> to vector<8x8xbf16>
    %cst_23 = arith.constant dense<0.000000e+00> : vector<8x8xf32>
    %49 = tpu.matmul %48, %31, %cst_23 {dimension_numbers = #tpu.dot_dimension_numbers<[1], [0], [0], [1], [0, 0, 1, 1], [], []>} : vector<8x8xbf16>, vector<8x8xbf16>, vector<8x8xf32> -> vector<8x8xf32>
    %50 = vector.extract_strided_slice %20 {offsets = [0, 8], sizes = [8, 8], strides = [1, 1]} : vector<8x32xbf16> to vector<8x8xbf16>
    %51 = vector.extract_strided_slice %21 {offsets = [0, 8], sizes = [8, 8], strides = [1, 1]} : vector<8x32xbf16> to vector<8x8xbf16>
    %52 = vector.extract_strided_slice %22 {offsets = [0, 8], sizes = [8, 8], strides = [1, 1]} : vector<8x32xbf16> to vector<8x8xbf16>
    %cst_24 = arith.constant dense<0.000000e+00> : vector<8x8xf32>
    %53 = tpu.matmul %50, %51, %cst_24 {dimension_numbers = #tpu.dot_dimension_numbers<[1], [1], [0], [0], [0, 0, 1, 0], [], []>} : vector<8x8xbf16>, vector<8x8xbf16>, vector<8x8xf32> -> vector<8x8xf32>
    %cst_25 = arith.constant -1.000000e+09 : f32
    %54 = vector.broadcast %cst_25 : f32 to vector<8x8xf32>
    %55 = arith.select %28, %53, %54 : vector<8x8xi1>, vector<8x8xf32>
    %cst_26 = arith.constant dense<0xFF800000> : vector<8xf32>
    %56 = vector.multi_reduction <maximumf>, %55, %cst_26 [1] : vector<8x8xf32> to vector<8xf32>
    %57 = vector.shape_cast %56 : vector<8xf32> to vector<8x1xf32>
    %58 = vector.broadcast %57 : vector<8x1xf32> to vector<8x8xf32>
    %59 = arith.subf %55, %58 : vector<8x8xf32>
    %60 = math.exp %59 : vector<8x8xf32>
    %cst_27 = arith.constant dense<0.000000e+00> : vector<8xf32>
    %61 = vector.multi_reduction <add>, %60, %cst_27 [1] : vector<8x8xf32> to vector<8xf32>
    %62 = vector.shape_cast %61 : vector<8xf32> to vector<8x1xf32>
    %63 = vector.broadcast %62 : vector<8x1xf32> to vector<8x8xf32>
    %64 = arith.divf %60, %63 : vector<8x8xf32>
    %65 = arith.truncf %64 : vector<8x8xf32> to vector<8x8xbf16>
    %c0_28 = arith.constant 0 : index
    %c1 = arith.constant 1 : index
    %c0_29 = arith.constant 0 : index
    %c0_30 = arith.constant 0 : index
    %66 = vector.load %arg13[%c0_28, %c1, %c0_29, %c0_30] : memref<1x4x8x8xbf16, #tpu.memory_space<vmem>>, vector<1x1x8x8xbf16>
    %67 = vector.shape_cast %66 : vector<1x1x8x8xbf16> to vector<8x8xbf16>
    %68 = vector.shape_cast %65 : vector<8x8xbf16> to vector<1x1x8x8xbf16>
    tpu.vector_store %arg13[%c0_28, %c1, %c0_29, %c0_30], %68 {strides = array<i32>} : memref<1x4x8x8xbf16, #tpu.memory_space<vmem>>, vector<1x1x8x8xbf16>,
    %69 = arith.truncf %64 : vector<8x8xf32> to vector<8x8xbf16>
    %cst_31 = arith.constant dense<0.000000e+00> : vector<8x8xf32>
    %70 = tpu.matmul %69, %52, %cst_31 {dimension_numbers = #tpu.dot_dimension_numbers<[1], [0], [0], [1], [0, 0, 1, 1], [], []>} : vector<8x8xbf16>, vector<8x8xbf16>, vector<8x8xf32> -> vector<8x8xf32>
    %71 = vector.extract_strided_slice %20 {offsets = [0, 16], sizes = [8, 8], strides = [1, 1]} : vector<8x32xbf16> to vector<8x8xbf16>
    %72 = vector.extract_strided_slice %21 {offsets = [0, 16], sizes = [8, 8], strides = [1, 1]} : vector<8x32xbf16> to vector<8x8xbf16>
    %73 = vector.extract_strided_slice %22 {offsets = [0, 16], sizes = [8, 8], strides = [1, 1]} : vector<8x32xbf16> to vector<8x8xbf16>
    %cst_32 = arith.constant dense<0.000000e+00> : vector<8x8xf32>
    %74 = tpu.matmul %71, %72, %cst_32 {dimension_numbers = #tpu.dot_dimension_numbers<[1], [1], [0], [0], [0, 0, 1, 0], [], []>} : vector<8x8xbf16>, vector<8x8xbf16>, vector<8x8xf32> -> vector<8x8xf32>
    %cst_33 = arith.constant -1.000000e+09 : f32
    %75 = vector.broadcast %cst_33 : f32 to vector<8x8xf32>
    %76 = arith.select %28, %74, %75 : vector<8x8xi1>, vector<8x8xf32>
    %cst_34 = arith.constant dense<0xFF800000> : vector<8xf32>
    %77 = vector.multi_reduction <maximumf>, %76, %cst_34 [1] : vector<8x8xf32> to vector<8xf32>
    %78 = vector.shape_cast %77 : vector<8xf32> to vector<8x1xf32>
    %79 = vector.broadcast %78 : vector<8x1xf32> to vector<8x8xf32>
    %80 = arith.subf %76, %79 : vector<8x8xf32>
    %81 = math.exp %80 : vector<8x8xf32>
    %cst_35 = arith.constant dense<0.000000e+00> : vector<8xf32>
    %82 = vector.multi_reduction <add>, %81, %cst_35 [1] : vector<8x8xf32> to vector<8xf32>
    %83 = vector.shape_cast %82 : vector<8xf32> to vector<8x1xf32>
    %84 = vector.broadcast %83 : vector<8x1xf32> to vector<8x8xf32>
    %85 = arith.divf %81, %84 : vector<8x8xf32>
    %86 = arith.truncf %85 : vector<8x8xf32> to vector<8x8xbf16>
    %c0_36 = arith.constant 0 : index
    %c2 = arith.constant 2 : index
    %c0_37 = arith.constant 0 : index
    %c0_38 = arith.constant 0 : index
    %87 = vector.load %arg13[%c0_36, %c2, %c0_37, %c0_38] : memref<1x4x8x8xbf16, #tpu.memory_space<vmem>>, vector<1x1x8x8xbf16>
    %88 = vector.shape_cast %87 : vector<1x1x8x8xbf16> to vector<8x8xbf16>
    %89 = vector.shape_cast %86 : vector<8x8xbf16> to vector<1x1x8x8xbf16>
    tpu.vector_store %arg13[%c0_36, %c2, %c0_37, %c0_38], %89 {strides = array<i32>} : memref<1x4x8x8xbf16, #tpu.memory_space<vmem>>, vector<1x1x8x8xbf16>,
    %90 = arith.truncf %85 : vector<8x8xf32> to vector<8x8xbf16>
    %cst_39 = arith.constant dense<0.000000e+00> : vector<8x8xf32>
    %91 = tpu.matmul %90, %73, %cst_39 {dimension_numbers = #tpu.dot_dimension_numbers<[1], [0], [0], [1], [0, 0, 1, 1], [], []>} : vector<8x8xbf16>, vector<8x8xbf16>, vector<8x8xf32> -> vector<8x8xf32>
    %92 = vector.extract_strided_slice %20 {offsets = [0, 24], sizes = [8, 8], strides = [1, 1]} : vector<8x32xbf16> to vector<8x8xbf16>
    %93 = vector.extract_strided_slice %21 {offsets = [0, 24], sizes = [8, 8], strides = [1, 1]} : vector<8x32xbf16> to vector<8x8xbf16>
    %94 = vector.extract_strided_slice %22 {offsets = [0, 24], sizes = [8, 8], strides = [1, 1]} : vector<8x32xbf16> to vector<8x8xbf16>
    %cst_40 = arith.constant dense<0.000000e+00> : vector<8x8xf32>
    %95 = tpu.matmul %92, %93, %cst_40 {dimension_numbers = #tpu.dot_dimension_numbers<[1], [1], [0], [0], [0, 0, 1, 0], [], []>} : vector<8x8xbf16>, vector<8x8xbf16>, vector<8x8xf32> -> vector<8x8xf32>
    %cst_41 = arith.constant -1.000000e+09 : f32
    %96 = vector.broadcast %cst_41 : f32 to vector<8x8xf32>
    %97 = arith.select %28, %95, %96 : vector<8x8xi1>, vector<8x8xf32>
    %cst_42 = arith.constant dense<0xFF800000> : vector<8xf32>
    %98 = vector.multi_reduction <maximumf>, %97, %cst_42 [1] : vector<8x8xf32> to vector<8xf32>
    %99 = vector.shape_cast %98 : vector<8xf32> to vector<8x1xf32>
    %100 = vector.broadcast %99 : vector<8x1xf32> to vector<8x8xf32>
    %101 = arith.subf %97, %100 : vector<8x8xf32>
    %102 = math.exp %101 : vector<8x8xf32>
    %cst_43 = arith.constant dense<0.000000e+00> : vector<8xf32>
    %103 = vector.multi_reduction <add>, %102, %cst_43 [1] : vector<8x8xf32> to vector<8xf32>
    %104 = vector.shape_cast %103 : vector<8xf32> to vector<8x1xf32>
    %105 = vector.broadcast %104 : vector<8x1xf32> to vector<8x8xf32>
    %106 = arith.divf %102, %105 : vector<8x8xf32>
    %107 = arith.truncf %106 : vector<8x8xf32> to vector<8x8xbf16>
    %c0_44 = arith.constant 0 : index
    %c3 = arith.constant 3 : index
    %c0_45 = arith.constant 0 : index
    %c0_46 = arith.constant 0 : index
    %108 = vector.load %arg13[%c0_44, %c3, %c0_45, %c0_46] : memref<1x4x8x8xbf16, #tpu.memory_space<vmem>>, vector<1x1x8x8xbf16>
    %109 = vector.shape_cast %108 : vector<1x1x8x8xbf16> to vector<8x8xbf16>
    %110 = vector.shape_cast %107 : vector<8x8xbf16> to vector<1x1x8x8xbf16>
    tpu.vector_store %arg13[%c0_44, %c3, %c0_45, %c0_46], %110 {strides = array<i32>} : memref<1x4x8x8xbf16, #tpu.memory_space<vmem>>, vector<1x1x8x8xbf16>,
    %111 = arith.truncf %106 : vector<8x8xf32> to vector<8x8xbf16>
    %cst_47 = arith.constant dense<0.000000e+00> : vector<8x8xf32>
    %112 = tpu.matmul %111, %94, %cst_47 {dimension_numbers = #tpu.dot_dimension_numbers<[1], [0], [0], [1], [0, 0, 1, 1], [], []>} : vector<8x8xbf16>, vector<8x8xbf16>, vector<8x8xf32> -> vector<8x8xf32>
    %113 = tpu.concatenate %49, %70, %91, %112 in 1 : vector<8x8xf32>, vector<8x8xf32>, vector<8x8xf32>, vector<8x8xf32> -> vector<8x32xf32>
    %114 = arith.truncf %113 : vector<8x32xf32> to vector<8x32xbf16>
    %c0_48 = arith.constant 0 : index
    %c0_49 = arith.constant 0 : index
    %115 = vector.load %arg8[%c0_48, %c0_49] : memref<32x32xbf16, #tpu.memory_space<vmem>>, vector<32x32xbf16>
    %cst_50 = arith.constant dense<0.000000e+00> : vector<8x32xf32>
    %116 = tpu.matmul %114, %115, %cst_50 {dimension_numbers = #tpu.dot_dimension_numbers<[1], [0], [0], [1], [0, 0, 1, 1], [], []>} : vector<8x32xbf16>, vector<32x32xbf16>, vector<8x32xf32> -> vector<8x32xf32>
    %c0_51 = arith.constant 0 : index
    %c0_52 = arith.constant 0 : index
    %117 = vector.load %arg9[%c0_51, %c0_52] : memref<1x32xf32, #tpu.memory_space<vmem>>, vector<1x32xf32>
    %118 = vector.broadcast %117 : vector<1x32xf32> to vector<8x32xf32>
    %119 = arith.addf %116, %118 : vector<8x32xf32>
    %120 = arith.addf %1, %119 : vector<8x32xf32>
    %cst_53 = arith.constant dense<0.000000e+00> : vector<8xf32>
    %121 = vector.multi_reduction <add>, %120, %cst_53 [1] : vector<8x32xf32> to vector<8xf32>
    %122 = vector.shape_cast %121 : vector<8xf32> to vector<8x1xf32>
    %cst_54 = arith.constant 3.200000e+01 : f32
    %123 = vector.broadcast %cst_54 : f32 to vector<8x1xf32>
    %124 = arith.divf %122, %123 : vector<8x1xf32>
    %125 = vector.broadcast %124 : vector<8x1xf32> to vector<8x32xf32>
    %126 = arith.subf %120, %125 : vector<8x32xf32>
    %127 = arith.mulf %126, %126 : vector<8x32xf32>
    %cst_55 = arith.constant dense<0.000000e+00> : vector<8xf32>
    %128 = vector.multi_reduction <add>, %127, %cst_55 [1] : vector<8x32xf32> to vector<8xf32>
    %129 = vector.shape_cast %128 : vector<8xf32> to vector<8x1xf32>
    %cst_56 = arith.constant 3.200000e+01 : f32
    %130 = vector.broadcast %cst_56 : f32 to vector<8x1xf32>
    %131 = arith.divf %129, %130 : vector<8x1xf32>
    %132 = vector.broadcast %124 : vector<8x1xf32> to vector<8x32xf32>
    %133 = arith.subf %120, %132 : vector<8x32xf32>
    %cst_57 = arith.constant 9.99999974E-6 : f32
    %134 = vector.broadcast %cst_57 : f32 to vector<8x1xf32>
    %135 = arith.addf %131, %134 : vector<8x1xf32>
    %136 = math.rsqrt %135 : vector<8x1xf32>
    %137 = vector.broadcast %136 : vector<8x1xf32> to vector<8x32xf32>
    %138 = arith.mulf %133, %137 : vector<8x32xf32>
    %c0_58 = arith.constant 0 : index
    %c0_59 = arith.constant 0 : index
    %139 = vector.load %arg10[%c0_58, %c0_59] : memref<1x32xf32, #tpu.memory_space<vmem>>, vector<1x32xf32>
    %140 = vector.broadcast %139 : vector<1x32xf32> to vector<8x32xf32>
    %141 = arith.mulf %138, %140 : vector<8x32xf32>
    %c0_60 = arith.constant 0 : index
    %c0_61 = arith.constant 0 : index
    %142 = vector.load %arg11[%c0_60, %c0_61] : memref<1x32xf32, #tpu.memory_space<vmem>>, vector<1x32xf32>
    %143 = vector.broadcast %142 : vector<1x32xf32> to vector<8x32xf32>
    %144 = arith.addf %141, %143 : vector<8x32xf32>
    %c0_62 = arith.constant 0 : index
    %c0_63 = arith.constant 0 : index
    %c0_64 = arith.constant 0 : index
    %145 = vector.load %arg12[%c0_62, %c0_63, %c0_64] : memref<1x8x32xf32, #tpu.memory_space<vmem>>, vector<1x8x32xf32>
    %146 = vector.shape_cast %145 : vector<1x8x32xf32> to vector<8x32xf32>
    %147 = vector.shape_cast %144 : vector<8x32xf32> to vector<1x8x32xf32>
    tpu.vector_store %arg12[%c0_62, %c0_63, %c0_64], %147 {strides = array<i32>} : memref<1x8x32xf32, #tpu.memory_space<vmem>>, vector<1x8x32xf32>,
    return
  }
  func.func @transform_0(%arg0: i32, %arg1: i32) -> (i32, i32, i32) {
    %c0_i32 = arith.constant 0 : i32
    %c0_i32_0 = arith.constant 0 : i32
    return %arg0, %arg1, %c0_i32 : i32, i32, i32
  }
  func.func @transform_1(%arg0: i32, %arg1: i32) -> (i32, i32, i32) {
    %c0_i32 = arith.constant 0 : i32
    %c0_i32_0 = arith.constant 0 : i32
    %c0_i32_1 = arith.constant 0 : i32
    return %arg0, %c0_i32, %c0_i32_0 : i32, i32, i32
  }
  func.func @transform_2(%arg0: i32, %arg1: i32) -> (i32, i32) {
    %c0_i32 = arith.constant 0 : i32
    %c0_i32_0 = arith.constant 0 : i32
    %c0_i32_1 = arith.constant 0 : i32
    return %c0_i32, %c0_i32_0 : i32, i32
  }
  func.func @transform_3(%arg0: i32, %arg1: i32) -> (i32, i32) {
    %c0_i32 = arith.constant 0 : i32
    %c0_i32_0 = arith.constant 0 : i32
    %c0_i32_1 = arith.constant 0 : i32
    return %c0_i32, %c0_i32_0 : i32, i32
  }
  func.func @transform_4(%arg0: i32, %arg1: i32) -> (i32, i32) {
    %c0_i32 = arith.constant 0 : i32
    %c0_i32_0 = arith.constant 0 : i32
    %c0_i32_1 = arith.constant 0 : i32
    return %c0_i32, %c0_i32_0 : i32, i32
  }
  func.func @transform_5(%arg0: i32, %arg1: i32) -> (i32, i32) {
    %c0_i32 = arith.constant 0 : i32
    %c0_i32_0 = arith.constant 0 : i32
    %c0_i32_1 = arith.constant 0 : i32
    return %c0_i32, %c0_i32_0 : i32, i32
  }
  func.func @transform_6(%arg0: i32, %arg1: i32) -> (i32, i32) {
    %c0_i32 = arith.constant 0 : i32
    %c0_i32_0 = arith.constant 0 : i32
    %c0_i32_1 = arith.constant 0 : i32
    return %c0_i32, %c0_i32_0 : i32, i32
  }
  func.func @transform_7(%arg0: i32, %arg1: i32) -> (i32, i32) {
    %c0_i32 = arith.constant 0 : i32
    %c0_i32_0 = arith.constant 0 : i32
    %c0_i32_1 = arith.constant 0 : i32
    return %c0_i32, %c0_i32_0 : i32, i32
  }
  func.func @transform_8(%arg0: i32, %arg1: i32) -> (i32, i32) {
    %c0_i32 = arith.constant 0 : i32
    %c0_i32_0 = arith.constant 0 : i32
    %c0_i32_1 = arith.constant 0 : i32
    return %c0_i32, %c0_i32_0 : i32, i32
  }
  func.func @transform_9(%arg0: i32, %arg1: i32) -> (i32, i32) {
    %c0_i32 = arith.constant 0 : i32
    %c0_i32_0 = arith.constant 0 : i32
    %c0_i32_1 = arith.constant 0 : i32
    return %c0_i32, %c0_i32_0 : i32, i32
  }
  func.func @transform_10(%arg0: i32, %arg1: i32) -> (i32, i32, i32) {
    %c0_i32 = arith.constant 0 : i32
    %c0_i32_0 = arith.constant 0 : i32
    return %arg0, %arg1, %c0_i32 : i32, i32, i32
  }
  func.func @transform_11(%arg0: i32, %arg1: i32) -> (i32, i32, i32, i32) {
    %c0_i32 = arith.constant 0 : i32
    %c0_i32_0 = arith.constant 0 : i32
    %c0_i32_1 = arith.constant 0 : i32
    return %arg0, %c0_i32, %arg1, %c0_i32_0 : i32, i32, i32, i32
  }
}

</mosaic_0001>

<bundles_post_ra>
// kernel: tpu_custom_call.1
= control target key start
LH: loop header
LB: loop body
LE: loop exit
PB: predicated region body
PF: predicated region fallthrough
CT: control target
= control target key end

     0   :  { %s2415_s0 = inlined_call_operand.hbm [shape: f32[2,8,32], index: 0, kind: input, shape index: {}]   ;;  %s2416_s1 = inlined_call_operand.hbm [shape: f32[2,8,32], index: 1, kind: input, shape index: {}]   ;;  %s2417_s2 = inlined_call_operand.hbm [shape: bf16[32,32], index: 2, kind: input, shape index: {}]   ;;  %s2418_s3 = inlined_call_operand.hbm [shape: bf16[32,64], index: 3, kind: input, shape index: {}]   ;;  %s2419_s4 = inlined_call_operand.vmem [shape: f32[1,32], index: 4, kind: input, shape index: {}]   ;;  %s2420_s5 = inlined_call_operand.vmem [shape: f32[1,64], index: 5, kind: input, shape index: {}]   ;;  %s2421_s6 = inlined_call_operand.hbm [shape: bf16[32,32], index: 6, kind: input, shape index: {}]   ;;  %s2422_s7 = inlined_call_operand.vmem [shape: f32[1,32], index: 7, kind: input, shape index: {}]   ;;  %s2423_s8 = inlined_call_operand.vmem [shape: f32[1,32], index: 8, kind: input, shape index: {}]   ;;  %s2424_s9 = inlined_call_operand.vmem [shape: f32[1,32], index: 9, kind: input, shape index: {}]   ;;  %s2425_s10 = inlined_call_operand.hbm [shape: f32[2,8,32], index: 10, kind: output, shape index: {0}]   ;;  %s2426_s11 = inlined_call_operand.hbm [shape: bf16[2,4,8,8], index: 11, kind: output, shape index: {1}]  }
   0x1   :  { %2433 = sst [smem:[#allocation23_spill]] %s2415_s0 }
   0x2   :  { %2434 = sst [smem:[#allocation24_spill]] %s2417_s2 }
   0x3   :  { %2435 = sst [smem:[#allocation25_spill]] %s2418_s3 }
   0x4   :  { %2436 = sst [smem:[#allocation26_spill]] %s2421_s6 }
   0x5   :  { %2437 = sst [smem:[#allocation27_spill]] %s2424_s9 }
   0x6   :  { %2438 = sst [smem:[#allocation28_spill]] %s2425_s10 }
   0x7   :  { %17 = vsyncpa [#allocation3], 0 }
   0x8   :  { %19 = vsyncpa [#allocation3 + $0x1], 0 }
   0x9   :  { %20 = vsyncpa [#allocation6], 0 }
   0xa   :  { %22 = vsyncpa [#allocation6 + $0x1], 0 }
   0xb   :  { %23 = vsyncpa [#allocation9], 0 }
   0xc   :  { %24 = vsyncpa [#allocation4], 0 }
   0xd   :  { %26 = vsyncpa [#allocation4 + $0x1], 0 }
   0xe   :  { %27 = vsyncpa [#allocation13], 0 }
   0xf   :  { %29 = vsyncpa [#allocation13 + $0x1], 0  ;;  %s2064_s17 = smov 0   ;;  %s2066_s18 = smov 0  }
  0x10   :  { %s2068_s19 = smov 0   ;;  %s2070_s20 = smov 0  }
  0x11   :  { %s2072_s21 = smov 0   ;;  %s2074_s22 = smov 0  }
  0x12 LB: > { %2439 = sst [smem:[#allocation20_spill]] %s1959_s17  ;;  %s2095_s23 = sadd.s32 4294967295, %s1979_s22   ;;  %s1979_s22 = sphi %s2074_s22, %s35_s22   ;;  %s1975_s21 = sphi %s2072_s21, %s2469_s21   ;;  %s1971_s20 = sphi %s2070_s20, %s2468_s20   ;;  %s1967_s19 = sphi %s2068_s19, %s2467_s19   ;;  %s1963_s18 = sphi %s2066_s18, %s2466_s18   ;;  %s1959_s17 = sphi %s2064_s17, %s2465_s17  }
  0x13   : > { %s1432_s24 = sadd.s32 4294967294, %s1979_s22   ;;  %p69_p0 = scmp.ne.s32.totalorder %s1963_s18, %s1959_s17 }
  0x14   : > { %p2428_p1 = scmp.eq.s32.totalorder %s2095_s23, 0  ;;  %p295_p3 = scmp.eq.s32.totalorder %s1432_s24, 1 }
  0x15   : > { %p1433_p5 = scmp.ge.s32.totalorder %s1979_s22, 1  ;;  %p330_p7 = scmp.lt.s32.totalorder %s1979_s22, 3 }
  0x16   : > { %p2104_p4 = por %p2428_p1, %p69_p0  ;;  %p2109_p6 = por %p295_p3, %p69_p0 }
  0x17   : > { %p2114_p8 = pnand %p1433_p5, %p330_p7  ;;  %s1981_s28 = smov [#allocation7]  }
  0x18   : > { %s2440_s25 = scalar_select %p2104_p4, 1, 0 }
  0x19   : > { %s2441_s26 = scalar_select %p2109_p6, 1, 0 }
  0x1a   : > { %s342_s29 = sshll.u32 %s1981_s28, 4  ;;  %p1600_p9 = pneg %p2114_p8  ;;  %s343_s29 = int_to_ptr.vmem [resolvable:$true] %s342_s29 }
  0x1b   : > { %2442 = sst [smem:[#allocation21_spill]] %s2441_s26  ;;  %s1982_s12 = smov [#allocation8]  }
  0x1c   : > { %p2123_p11 = pnand %p1600_p9, %p2428_p1  ;;  %s355_s13 = sshll.u32 %s1982_s12, 4  ;;  %s356_s13 = int_to_ptr.vmem [resolvable:$true] %s355_s13 }
  0x1d   : > { %s1983_s14 = smov [#allocation10]   ;;  %s1734_s16 = scalar_lea.vmem %s343_s29, 256 }
  0x1e   : > { %s374_s15 = sshll.u32 %s1983_s14, 4  ;;  %p1725_p12 = pneg %p2123_p11  ;;  %s375_s15 = int_to_ptr.vmem [resolvable:$true] %s374_s15 }
  0x1f   : > { %p1735_p13 = scmp.ne.s32.totalorder %s343_s29, %s1734_s16  ;;  %p1742_p5 = scmp.lt.s32.totalorder %s343_s29, %s343_s29 }
  0x20   : > { %p1743_p7 = scmp.lt.s32.totalorder %s1734_s16, %s1734_s16 }
  0x21   : > { %p1737_p0 = pnand %p1735_p13, %p1725_p12 }
  0x22   : > { %p1744_p9 = por %p1743_p7, %p1742_p5 }
  0x23   : > { %p1738_p3 = pneg %p1737_p0 }
  0x25   : > { %p1745_p10 = pnand %p1744_p9, %p1738_p3 }
  0x27   : > { %1748 = shalt.err (!%p1745_p10)
}
  0x28   : > { %s1984_s24 = smov 64   ;;  %s1985_s28 = smov 4  }
  0x29   : > { %s2445_s2 = sld [smem:[#allocation24_spill]]  ;;  %s1760_s26 = scalar_lea.vmem %s356_s13, 256 }
  0x2a   : > { %p1761_p1 = scmp.ne.s32.totalorder %s356_s13, %s1760_s26  ;;  %p1768_p2 = scmp.lt.s32.totalorder %s356_s13, %s356_s13 }
  0x2b   : > { %p1769_p6 = scmp.lt.s32.totalorder %s1760_s26, %s1760_s26 }
  0x2c   : > { %p1763_p13 = pnand %p1761_p1, %p1725_p12 }
  0x2d   : > { %p1770_p5 = por %p1769_p6, %p1768_p2 }
  0x2e   : > { %p1764_p0 = pneg %p1763_p13 }
  0x2f   : > { %1603 = dma.hbm_to_vmem [thread:$0]  (!%p2123_p11), %s2445_s2, 256, %s343_s29, [#allocation6], %s1984_s24, %s1984_s24, %s1985_s28  }
  0x30   : > { %p1771_p3 = pnand %p1770_p5, %p1764_p0 }
  0x32   : > { %1774 = shalt.err (!%p1771_p3)
}
  0x33   : > { %s2446_s3 = sld [smem:[#allocation25_spill]]  ;;  %s1786_s29 = scalar_lea.vmem %s375_s15, 256 }
  0x34   : > { %p1787_p10 = scmp.ne.s32.totalorder %s375_s15, %s1786_s29  ;;  %p1794_p9 = scmp.lt.s32.totalorder %s375_s15, %s375_s15 }
  0x35   : > { %p1795_p13 = scmp.lt.s32.totalorder %s1786_s29, %s1786_s29 }
  0x36   : > { %p1789_p7 = pnand %p1787_p10, %p1725_p12 }
  0x37   : > { %p1796_p4 = por %p1795_p13, %p1794_p9 }
  0x38   : > { %p1790_p1 = pneg %p1789_p7 }
  0x39   : > { %1606 = dma.hbm_to_vmem [thread:$0]  (!%p2123_p11), %s2446_s3, 256, %s356_s13, [#allocation9], %s1984_s24, %s1984_s24, %s1985_s28  }
  0x3a   : > { %p1797_p2 = pnand %p1796_p4, %p1790_p1 }
  0x3c   : > { %1800 = shalt.err (!%p1797_p2)
}
  0x3d   : > { %s2447_s6 = sld [smem:[#allocation26_spill]]  ;;  %s56_s17 = sadd.s32 1, %s1967_s19 }
  0x3e   : > { %s47_s13 = sadd.s32 1, %s1975_s21  ;;  %p63_p4 = scmp.ne.s32.totalorder %s1967_s19, %s1963_s18 }
  0x3f   : > { %p49_p6 = scmp.ge.s32.totalorder %s47_s13, 2  ;;  %p64_p12 = scmp.eq.s32.totalorder %s1979_s22, 0 }
  0x40   : > { %p2448_p0 = scmp.eq.s32.totalorder %s2095_s23, 1  ;;  %p1627_p3 = scmp.lt.s32.totalorder %s1979_s22, 2 }
  0x41   : > { %s2471_s13 = smov (%p49_p6, %s47_s13), 0  ;;  %p65_p10 = por %p64_p12, %p63_p4 }
  0x42   : > { %p2160_p5 = por %p2448_p0, %p63_p4  ;;  %2450 = sst [smem:[#allocation22_spill]] %s2471_s13 }
  0x43   : > { %1609 = dma.hbm_to_vmem [thread:$0]  (!%p2123_p11), %s2447_s6, 256, %s375_s15, [#allocation9], %s1984_s24, %s1984_s24, %s1985_s28  }
  0x44   : > { %s397_s14 = sand.u32 1, %s1967_s19   ;;  %s51_s16 = ssub.s32 %s1975_s21, %s2471_s13 }
  0x45   : > { %p54_p11 = scmp.eq.s32.totalorder %s51_s16, 0  ;;  %s1438_s15 = sshll.u32 %s397_s14, 3 }
  0x46   : > { %s1439_s24 = sshll.u32 %s1975_s21, 7  ;;  %s2451_s0 = sld [smem:[#allocation23_spill]] }
  0x47   : > { %s2172_s28 = scalar_select %p54_p11, %s1967_s19, %s56_s17  }
  0x48   : > { %s401_s2 = scalar_lea.vmem [#allocation2], %s1438_s15  ;;  %p2179_p7 = pnand %p1627_p3, %p65_p10 }
  0x49   : > { %s409_s3 = sshll.u32 %s401_s2, 4  ;;  %s2186_s16 = scalar_lea.hbm %s2416_s1, %s1439_s24  ;;  %s410_s3 = int_to_ptr.vmem [resolvable:$true] %s409_s3 }
  0x4a   : > { %s416_s17 = sand.u32 1, %s1979_s22   ;;  %s398_s13 = scalar_lea.sflag [#allocation3], %s397_s14 }
  0x4b   : > { %p1803_p1 = pneg %p2179_p7  ;;  %s1814_s29 = scalar_lea.vmem %s410_s3, 128 }
  0x4c   : > { %s407_s12 = scalar_lea.hbm %s2451_s0, %s1439_s24  ;;  %p1815_p9 = scmp.ne.s32.totalorder %s410_s3, %s1814_s29 }
  0x4d   : > { %s1986_s2 = smov [#allocation2]  }
  0x4e   : > { %p1817_p13 = pnand %p1815_p9, %p1803_p1  ;;  %s1819_s26 = sshll.u32 %s1986_s2, 4  ;;  %s1820_s26 = int_to_ptr.vmem [resolvable:$false] %s1819_s26 }
  0x4f   : > { %s1821_s0 = scalar_lea.vmem %s1820_s26, 256  ;;  %p1822_p4 = scmp.lt.s32.totalorder %s410_s3, %s1820_s26 }
  0x50   : > { %p1818_p2 = pneg %p1817_p13  ;;  %p1823_p6 = scmp.lt.s32.totalorder %s1821_s0, %s1814_s29 }
  0x52   : > { %p1824_p12 = por %p1823_p6, %p1822_p4 }
  0x54   : > { %p1825_p0 = pnand %p1824_p12, %p1818_p2 }
  0x56   : > { %1828 = shalt.err (!%p1825_p0)
}
  0x57   : > { %1613 = dma.hbm_to_vmem [thread:$0]  (!%p2179_p7), %s407_s12, 128, %s410_s3, %s398_s13  }
  0x58   : > { %s420_s9 = scalar_lea.vmem [#allocation5], %s1438_s15  ;;  %s417_s14 = scalar_lea.sflag [#allocation6], %s416_s17 }
  0x59   : > { %s427_s10 = sshll.u32 %s420_s9, 4  ;;  %s1987_s2 = smov [#allocation5]   ;;  %s428_s10 = int_to_ptr.vmem [resolvable:$true] %s427_s10 }
  0x5a   : > { %s1842_s24 = scalar_lea.vmem %s428_s10, 128  ;;  %s1847_s26 = sshll.u32 %s1987_s2, 4  ;;  %s1848_s26 = int_to_ptr.vmem [resolvable:$false] %s1847_s26 }
  0x5b   : > { %p1843_p3 = scmp.ne.s32.totalorder %s428_s10, %s1842_s24  ;;  %s1849_s0 = scalar_lea.vmem %s1848_s26, 256 }
  0x5c   : > { %p1850_p9 = scmp.lt.s32.totalorder %s428_s10, %s1848_s26  ;;  %p1851_p13 = scmp.lt.s32.totalorder %s1849_s0, %s1842_s24 }
  0x5d   : > { %p1845_p10 = pnand %p1843_p3, %p1803_p1 }
  0x5e   : > { %p1852_p2 = por %p1851_p13, %p1850_p9 }
  0x5f   : > { %p1846_p11 = pneg %p1845_p10 }
  0x61   : > { %p1853_p4 = pnand %p1852_p2, %p1846_p11 }
  0x63   : > { %1856 = shalt.err (!%p1853_p4)
}
  0x64   : > { %1616 = dma.hbm_to_vmem [thread:$0]  (!%p2179_p7), %s2186_s16, 128, %s428_s10, %s417_s14  }
  0x65   : > { %436 = sbr.rel (%p2114_p8) target bundleno = 1806 (0x70e), region = 60  ;;  %s2205_s3 = sand.u32 (!%p2114_p8), 1, %s1963_s18  }
  0x66   : > { %s2208_s13 = sshll.u32 (!%p2114_p8), %s2205_s3, 3  ;;  %s439_s15 = scalar_lea.sflag (!%p2114_p8), [#allocation3], %s2205_s3 }
  0x67   : > { %s442_s12 = scalar_lea.vmem (!%p2114_p8), [#allocation2], %s2208_s13  ;;  %p2453_p1 = scmp.ne.s32.totalorder (!%p2114_p8), %s2440_s25, 0 }
  0x6a   : > { %1934 = dma.done.wait (%p2453_p1), %s439_s15, 128  }
  0x6b   : > { %1936 = vsyncadd (%p2453_p1), %s439_s15, 4294967168  ;;  %s447_s6 = sand.u32 1, %s2095_s23   ;;  %s451_s16 = scalar_lea.vmem [#allocation5], %s2208_s13 }
  0x6c   : > { %s448_s27 = scalar_lea.sflag [#allocation6], %s447_s6 }
  0x6d   : > { %1938 = dma.done.wait (%p2453_p1), %s448_s27, 128  }
  0x6e   : > { %1940 = vsyncadd (%p2453_p1), %s448_s27, 4294967168  ;;  %p2454_p8 = scmp.eq.s32.totalorder %s2095_s23, 0 }
  0x70   : > { %1942 = dma.done.wait (%p2454_p8), [#allocation6], 256   ;;  %p2455_p7 = pmov %p2454_p8 }
  0x72   : > { %1944 = vsyncadd (%p2455_p7), [#allocation6], 4294967040  ;;  %p2456_p6 = pmov %p2455_p7 }
  0x74   : > { %1946 = dma.done.wait (%p2456_p6), [#allocation9], 512   ;;  %p2457_p12 = pmov %p2456_p6 }
  0x75   : > { %v1988_v0 = vmov 0.0   ;;  %vm1989_vm0 = vmmov 0   ;;  %v1699_v1 = vld [vmem:[#allocation7 + $0x8] sm:$0xff]   ;;  %v1700_v2 = vld [vmem:[#allocation8 + $0x8] sm:$0xff]   ;;  %v1701_v3 = vld [vmem:[#allocation7] sm:$0xff]   ;;  %vm539_vm1 = vcmask 261120   ;;  %v654_v34 = vlaneseq }
  0x76   : > { %1948 = vsyncadd (%p2457_p12), [#allocation9], 4294966784  ;;  %1508 = vmatprep.subr.bf16.mxu0 %v1988_v0  ;;  %1516 = vmatprep.subr.bf16.mxu1 %v1988_v0  ;;  %v1702_v4 = vld [vmem:[#allocation8] sm:$0xff]   ;;  %v2238_v5 = vld [vmem:[%s442_s12] sm:$0xff]  ;;  %vm661_vm2 = vcmask 64512   ;;  %s1990_s9 = smov 112  }
  0x77   : > { %1512 = vmatprep.mubr.msk.bf16.mxu0 %vm1989_vm0, %v1988_v0  ;;  %1520 = vmatprep.mubr.msk.bf16.mxu1 %vm1989_vm0, %v1988_v0  ;;  %v514_v6 = vld [vmem:[%s451_s16] sm:$0xff]  ;;  %v515_v7 = vpack.c.bf16 %v2238_v5, %v2238_v5  ;;  %v1450_v9 = vld [vmem:[%s2419_s4] ss:$0 sm:$0xff]  ;;  %s1991_s10 = smov 120   ;;  %s1992_s14 = smov 104   ;;  %v655_v35 = vshrl.u32 %v654_v34, 7 }
  0x78   : > { %1509 = vmatpush3.bf16.msra.mxu0 %v1699_v1  ;;  %1517 = vmatpush3.bf16.msra.mxu1 %v1700_v2  ;;  %v584_v8 = vpack.c.bf16 %v514_v6, %v514_v6  ;;  %v1454_v10 = vld [vmem:[%s2420_s5] ss:$0 sm:$0xff]  ;;  %v659_v36 = vand.u32 127, %v654_v34  ;;  %s1993_s24 = smov 96   ;;  %s1994_s2 = smov 80   ;;  %vm729_vm4 = vcmask 1043456  }
  0x79   : > { %1510 = vmatprep.subr.bf16.mxu0 %v1988_v0  ;;  %1518 = vmatprep.subr.bf16.mxu1 %v1988_v0  ;;  %s1995_s26 = smov 72   ;;  %s1449_s0 = sshll.u32 %s2205_s3, 4  ;;  %vm721_vm5 = vcmask 60416   ;;  %vm1126_vm6 = vcmask 130048   ;;  %vm1128_vm7 = vcmask 195584  }
  0x7a   : > { %vm660_vm3 = vcmp.le.s32.totalorder %v659_v36, %v655_v35  ;;  %s1996_s15 = smov 88   ;;  %s2301_s12 = scalar_lea.vmem [#allocation12], %s1449_s0 }
  0x7b   : > { %s1997_s6 = smov 8   ;;  %s1998_s27 = smov 16  }
  0x7c   : > { %1511 = vmatpush3.bf16.msra.mxu0 %v1701_v3  ;;  %1519 = vmatpush3.bf16.msra.mxu1 %v1702_v4  ;;  %s1999_s16 = smov 24   ;;  %s1482_s17 = sshll.u32 %s1971_s20, 8 }
  0x7d   : > { %1524 = vmatprep.subr.bf16.mxu0 %v1988_v0  ;;  %1530 = vmatprep.subr.bf16.mxu1 %v1988_v0  ;;  %s1263_s29 = sshll.u32 %s2301_s12, 4  ;;  %s2342_s29 = int_to_ptr.vmem [resolvable:$true] %s1263_s29 }
  0x7f   : > { %1513 = vmatmul.mubr.msk.bf16.vlgmr.msra.gmra.mxu0 %vm539_vm1, %v515_v7  ;;  %1521 = vmatmul.mubr.msk.bf16.vlgmr.msra.gmra.mxu1 %vm539_vm1, %v584_v8 }
  0x80   : > { %1526 = vmatprep.mubr.msk.bf16.mxu0 %vm1989_vm0, %v1988_v0  ;;  %1532 = vmatprep.mubr.msk.bf16.mxu1 %vm1989_vm0, %v1988_v0 }
 0x13f   : > { %v577_v11 = vpop.f32.mrf.mxu0  ;;  %v645_v13 = vpop.f32.mrf.mxu1 }
 0x140   : > { %v578_v12 = vadd.f32 %v1450_v9, %v577_v11  ;;  %v646_v14 = vadd.f32 %v1454_v10, %v645_v13 }
 0x141   : > { %v1514_v15 = vpop.f32.mrf.mxu0  ;;  %v1522_v17 = vpop.f32.mrf.mxu1 }
 0x142   : > { %v583_v16 = vmul.f32 0.35355338, %v578_v12  ;;  %v2256_v18 = vpack.c.bf16 %v646_v14, %v646_v14 }
 0x143   : > { %v580_v19 = vpop.f32.mrf.mxu0  ;;  %v648_v20 = vpop.f32.mrf.mxu1 }
 0x144   : > { %v651_v21 = vpack.c.bf16 %v583_v16, %v583_v16  ;;  %889 = vrot.lane.b32.xlu1 %v2256_v18, %s1990_s9  ;;  %776 = vrot.lane.b32.xlu0 %v2256_v18, %s1991_s10  ;;  %v666_v23 = vsel %vm661_vm2, %v2256_v18, 0 }
 0x145   : > { %v1515_v22 = vpop.f32.mrf.mxu0  ;;  %v1523_v24 = vpop.f32.mrf.mxu1  ;;  %1525 = vmatpush3.bf16.xpose.msra.mxu0 %v666_v23 }
 0x146   : > { %1536 = vmatprep.subr.bf16.mxu0 %v1988_v0 }
 0x148   : > { %887 = vrot.lane.b32.xlu1 %v651_v21, %s1990_s9  ;;  %774 = vrot.lane.b32.xlu0 %v651_v21, %s1991_s10 }
 0x14c   : > { %1000 = vrot.lane.b32.xlu1 %v651_v21, %s1992_s14  ;;  %1002 = vrot.lane.b32.xlu0 %v2256_v18, %s1992_s14  ;;  %s2340_s14 = scalar_lea.hbm %s2426_s11, %s1482_s17 }
 0x14d   : > { %1527 = vmatmul.mubr.msk.bf16.vlgmr.msra.gmra.mxu0 %vm661_vm2, %v651_v21 }
 0x14e   : > { %1538 = vmatprep.mubr.msk.bf16.mxu0 %vm1989_vm0, %v1988_v0 }
 0x1b6   : > { %v777_v25 = vpop.permute.xlu0 %776  ;;  %v890_v27 = vpop.permute.xlu1 %889 }
 0x1b7   : > { %v782_v26 = vsel %vm661_vm2, %v777_v25, 0  ;;  %v895_v29 = vsel %vm661_vm2, %v890_v27, 0 }
 0x1b8   : > { %1537 = vmatpush3.bf16.xpose.msra.mxu0 %v782_v26 }
 0x1b9   : > { %1548 = vmatprep.subr.bf16.mxu0 %v1988_v0 }
 0x1ba   : > { %v775_v28 = vpop.permute.xlu0 %774  ;;  %v888_v31 = vpop.permute.xlu1 %887 }
 0x1be   : > { %v1003_v30 = vpop.permute.xlu0 %1002  ;;  %v1001_v33 = vpop.permute.xlu1 %1000 }
 0x1bf   : > { %1539 = vmatmul.mubr.msk.bf16.vlgmr.msra.gmra.mxu0 %vm661_vm2, %v775_v28  ;;  %v1008_v32 = vsel %vm661_vm2, %v1003_v30, 0 }
 0x1c0   : > { %1549 = vmatpush3.bf16.xpose.msra.mxu0 %v895_v29  ;;  %1550 = vmatprep.mubr.msk.bf16.mxu0 %vm1989_vm0, %v1988_v0 }
 0x1c1   : > { %1560 = vmatprep.subr.bf16.mxu0 %v1988_v0 }
 0x1c7   : > { %1551 = vmatmul.mubr.msk.bf16.vlgmr.msra.gmra.mxu0 %vm661_vm2, %v888_v31 }
 0x1c8   : > { %1561 = vmatpush3.bf16.xpose.msra.mxu0 %v1008_v32  ;;  %1562 = vmatprep.mubr.msk.bf16.mxu0 %vm1989_vm0, %v1988_v0 }
 0x1c9   : > { %1572 = vmatprep.subr.bf16.mxu0 %v1988_v0 }
 0x1cf   : > { %1563 = vmatmul.mubr.msk.bf16.vlgmr.msra.gmra.mxu0 %vm661_vm2, %v1001_v33 }
 0x1d0   : > { %1576 = vmatprep.mubr.msk.bf16.mxu0 %vm1989_vm0, %v1988_v0 }
 0x20d   : > { %v702_v37 = vpop.f32.mrf.mxu0 }
 0x20e   : > { %v708_v38 = vsel %vm660_vm3, %v702_v37, -1e+09 }
 0x20f   : > { %v1528_v39 = vpop.f32.mrf.mxu0  ;;  %v709_v40 = vsel %vm661_vm2, %v708_v38, -inf }
 0x210   : > { %710 = vmax.xlane.f32.xlu0 %v709_v40 }
 0x211   : > { %v705_v41 = vpop.f32.mrf.mxu0 }
 0x213   : > { %v1529_v42 = vpop.f32.mrf.mxu0 }
 0x27f   : > { %v818_v43 = vpop.f32.mrf.mxu0 }
 0x280   : > { %v824_v44 = vsel %vm660_vm3, %v818_v43, -1e+09 }
 0x281   : > { %v1540_v45 = vpop.f32.mrf.mxu0  ;;  %v825_v46 = vsel %vm661_vm2, %v824_v44, -inf }
 0x282   : > { %826 = vmax.xlane.f32.xlu1 %v825_v46 }
 0x283   : > { %v821_v47 = vpop.f32.mrf.mxu0 }
 0x284   : > { %v1703_v47 = vld [vmem:[#allocation10 + $0x8] sm:$0xff]  }
 0x285   : > { %v1541_v48 = vpop.f32.mrf.mxu0  ;;  %1573 = vmatpush3.bf16.msra.mxu0 %v1703_v47 }
 0x286   : > { %1574 = vmatprep.subr.bf16.mxu0 %v1988_v0 }
 0x287   : > { %v931_v49 = vpop.f32.mrf.mxu0 }
 0x288   : > { %v937_v50 = vsel %vm660_vm3, %v931_v49, -1e+09 }
 0x289   : > { %v1552_v51 = vpop.f32.mrf.mxu0  ;;  %v938_v52 = vsel %vm661_vm2, %v937_v50, -inf }
 0x28a   : > { %939 = vmax.xlane.f32.xlu0 %v938_v52 }
 0x28b   : > { %v934_v53 = vpop.f32.mrf.mxu0 }
 0x28d   : > { %v1553_v54 = vpop.f32.mrf.mxu0 }
 0x28f   : > { %v1044_v55 = vpop.f32.mrf.mxu0 }
 0x290   : > { %v1050_v56 = vsel %vm660_vm3, %v1044_v55, -1e+09 }
 0x291   : > { %v1564_v57 = vpop.f32.mrf.mxu0  ;;  %v1051_v58 = vsel %vm661_vm2, %v1050_v56, -inf }
 0x292   : > { %1052 = vmax.xlane.f32.xlu0 %v1051_v58 }
 0x293   : > { %v1047_v59 = vpop.f32.mrf.mxu0 }
 0x295   : > { %v1565_v60 = vpop.f32.mrf.mxu0 }
 0x299   : > { %v711_v61 = vpop.xlane.xlu0 %710 }
 0x29a   : > { %v712_v62 = vsub.f32 %v708_v38, %v711_v61 }
 0x29c   : > { %v713_v63 = vmul.f32 1.442695, %v712_v62 }
 0x29e   : > { %1705 = vpow2.f32 %v713_v63 }
 0x2ab   : > { %v1706_v1 = vpop.eup %1705 }
 0x2ac   : > { %v715_v2 = vsel %vm661_vm2, %v1706_v1, 0.0 }
 0x2ad   : > { %716 = vadd.xlane.f32.xlu1 %v715_v2 }
 0x2be   : > { %724 = vrot.lane.b32.xlu1 %v2256_v18, %s1993_s24  ;;  %s1235_s24 = scalar_lea.sflag [#allocation13], %s2205_s3 }
 0x30b   : > { %v827_v3 = vpop.xlane.xlu1 %826 }
 0x30c   : > { %v828_v4 = vsub.f32 %v824_v44, %v827_v3 }
 0x30e   : > { %v829_v6 = vmul.f32 1.442695, %v828_v4  ;;  %v1469_v4 = vld [vmem:[%s2422_s7] ss:$0 sm:$0xff] }
 0x310   : > { %1707 = vpow2.f32 %v829_v6 }
 0x313   : > { %v940_v7 = vpop.xlane.xlu0 %939 }
 0x314   : > { %v941_v8 = vsub.f32 %v937_v50, %v940_v7  ;;  %v1704_v50 = vld [vmem:[#allocation10] sm:$0xff]  }
 0x315   : > { %1575 = vmatpush3.bf16.msra.mxu0 %v1704_v50 }
 0x316   : > { %v942_v9 = vmul.f32 1.442695, %v941_v8 }
 0x318   : > { %1709 = vpow2.f32 %v942_v9 }
 0x31b   : > { %v1053_v10 = vpop.xlane.xlu0 %1052 }
 0x31c   : > { %v1054_v11 = vsub.f32 %v1050_v56, %v1053_v10 }
 0x31d   : > { %v1708_v12 = vpop.eup %1707 }
 0x31e   : > { %v1055_v13 = vmul.f32 1.442695, %v1054_v11  ;;  %v831_v14 = vsel %vm661_vm2, %v1708_v12, 0.0 }
 0x31f   : > { %832 = vadd.xlane.f32.xlu0 %v831_v14 }
 0x320   : > { %1711 = vpow2.f32 %v1055_v13 }
 0x325   : > { %v1710_v15 = vpop.eup %1709 }
 0x326   : > { %v944_v16 = vsel %vm661_vm2, %v1710_v15, 0.0 }
 0x327   : > { %945 = vadd.xlane.f32.xlu1 %v944_v16 }
 0x32d   : > { %v1712_v17 = vpop.eup %1711 }
 0x32e   : > { %v1057_v19 = vsel %vm661_vm2, %v1712_v17, 0.0 }
 0x32f   : > { %1058 = vadd.xlane.f32.xlu0 %v1057_v19 }
 0x336   : > { %v717_v20 = vpop.xlane.xlu1 %716 }
 0x337   : > { %1713 = vrcp.f32 %v717_v20 }
 0x338   : > { %952 = vrot.lane.b32.xlu1 %v2256_v18, %s1994_s2  ;;  %s1857_s2 = scalar_lea.vmem %s2342_s29, 256 }
 0x339   : > { %p1858_p0 = scmp.ne.s32.totalorder %s2342_s29, %s1857_s2 }
 0x33a   : > { %v725_v21 = vpop.permute.xlu1 %724 }
 0x33b   : > { %v731_v22 = vsel %vm729_vm4, %v725_v21, 0  ;;  %p1859_p3 = pnand %p1858_p0, %p2160_p5 }
 0x33c   : > { %1531 = vmatpush3.bf16.msra.mxu1 %v731_v22  ;;  %1065 = vrot.lane.b32.xlu1 %v2256_v18, %s1995_s26  ;;  %s2000_s26 = smov [#allocation12]  }
 0x33d   : > { %1542 = vmatprep.subr.bf16.mxu1 %v1988_v0  ;;  %p1860_p10 = pneg %p1859_p3  ;;  %s1861_s0 = sshll.u32 %s2000_s26, 4  ;;  %s1862_s0 = int_to_ptr.vmem [resolvable:$false] %s1861_s0 }
 0x33e   : > { %p1864_p11 = scmp.lt.s32.totalorder %s2342_s29, %s1862_s0 }
 0x344   : > { %v1714_v23 = vpop.eup %1713 }
 0x345   : > { %839 = vrot.lane.b32.xlu0 %v2256_v18, %s1996_s15  ;;  %v719_v24 = vmul.f32 %v1714_v23, %v1706_v1  ;;  %s1863_s15 = scalar_lea.vmem %s1862_s0, 512 }
 0x346   : > { %p1865_p9 = scmp.lt.s32.totalorder %s1863_s15, %s1857_s2 }
 0x347   : > { %v720_v25 = vpack.c.bf16 %v719_v24, %v719_v24 }
 0x348   : > { %p1866_p13 = por %p1865_p9, %p1864_p11 }
 0x349   : > { %722 = vst.msk [vmem:[%s2301_s12] sm:$0xf] %vm721_vm5, %v720_v25  ;;  %1533 = vmatmul.mubr.msk.bf16.vlgmr.msra.gmra.mxu1 %vm661_vm2, %v720_v25 }
 0x34a   : > { %1544 = vmatprep.mubr.msk.bf16.mxu1 %vm1989_vm0, %v1988_v0  ;;  %p1867_p2 = pnand %p1866_p13, %p1860_p10 }
 0x3a8   : > { %v833_v26 = vpop.xlane.xlu0 %832 }
 0x3a9   : > { %1715 = vrcp.f32 %v833_v26 }
 0x3b0   : > { %v946_v27 = vpop.xlane.xlu1 %945 }
 0x3b1   : > { %1717 = vrcp.f32 %v946_v27 }
 0x3b4   : > { %v953_v34 = vpop.permute.xlu1 %952 }
 0x3b5   : > { %v958_v36 = vsel %vm729_vm4, %v953_v34, 0 }
 0x3b6   : > { %v1716_v28 = vpop.eup %1715 }
 0x3b7   : > { %v835_v18 = vmul.f32 %v1716_v28, %v1708_v12 }
 0x3b8   : > { %v1059_v29 = vpop.xlane.xlu0 %1058  ;;  %v1066_v39 = vpop.permute.xlu1 %1065 }
 0x3b9   : > { %1719 = vrcp.f32 %v1059_v29  ;;  %v836_v30 = vpack.c.bf16 %v835_v18, %v835_v18  ;;  %v1071_v41 = vsel %vm729_vm4, %v1066_v39, 0 }
 0x3bb   : > { %1461 = vst.msk [vmem:[%s2301_s12 + $0x4] sm:$0xf] %vm721_vm5, %v836_v30 }
 0x3bc   : > { %v840_v31 = vpop.permute.xlu0 %839 }
 0x3bd   : > { %v845_v32 = vsel %vm729_vm4, %v840_v31, 0 }
 0x3be   : > { %v1718_v33 = vpop.eup %1717  ;;  %1543 = vmatpush3.bf16.msra.mxu1 %v845_v32 }
 0x3bf   : > { %1554 = vmatprep.subr.bf16.mxu1 %v1988_v0  ;;  %v948_v35 = vmul.f32 %v1718_v33, %v1710_v15 }
 0x3c1   : > { %1545 = vmatmul.mubr.msk.bf16.vlgmr.msra.gmra.mxu1 %vm661_vm2, %v836_v30  ;;  %v949_v37 = vpack.c.bf16 %v948_v35, %v948_v35 }
 0x3c2   : > { %1555 = vmatpush3.bf16.msra.mxu1 %v958_v36  ;;  %1556 = vmatprep.mubr.msk.bf16.mxu1 %vm1989_vm0, %v1988_v0 }
 0x3c3   : > { %1566 = vmatprep.subr.bf16.mxu1 %v1988_v0  ;;  %1464 = vst.msk [vmem:[%s2301_s12 + $0x8] sm:$0xf] %vm721_vm5, %v949_v37 }
 0x3c6   : > { %v1720_v38 = vpop.eup %1719 }
 0x3c7   : > { %v1061_v40 = vmul.f32 %v1720_v38, %v1712_v17 }
 0x3c9   : > { %1557 = vmatmul.mubr.msk.bf16.vlgmr.msra.gmra.mxu1 %vm661_vm2, %v949_v37  ;;  %v1062_v42 = vpack.c.bf16 %v1061_v40, %v1061_v40 }
 0x3ca   : > { %1567 = vmatpush3.bf16.msra.mxu1 %v1071_v41  ;;  %1568 = vmatprep.mubr.msk.bf16.mxu1 %vm1989_vm0, %v1988_v0 }
 0x3cb   : > { %1467 = vst.msk [vmem:[%s2301_s12 + $0xc] sm:$0xf] %vm721_vm5, %v1062_v42 }
 0x3d1   : > { %1569 = vmatmul.mubr.msk.bf16.vlgmr.msra.gmra.mxu1 %vm661_vm2, %v1062_v42 }
 0x409   : > { %v767_v43 = vpop.f32.mrf.mxu1 }
 0x40b   : > { %v1534_v44 = vpop.f32.mrf.mxu1 }
 0x40d   : > { %v770_v45 = vpop.f32.mrf.mxu1 }
 0x40f   : > { %v1535_v46 = vpop.f32.mrf.mxu1 }
 0x481   : > { %v881_v48 = vpop.f32.mrf.mxu1 }
 0x482   : > { %1114 = vrot.lane.b32.xlu0 %v881_v48, %s1997_s6 }
 0x483   : > { %v1546_v49 = vpop.f32.mrf.mxu1 }
 0x485   : > { %v884_v51 = vpop.f32.mrf.mxu1 }
 0x487   : > { %v1547_v52 = vpop.f32.mrf.mxu1 }
 0x489   : > { %v994_v53 = vpop.f32.mrf.mxu1 }
 0x48a   : > { %1118 = vrot.lane.b32.xlu1 %v994_v53, %s1998_s27 }
 0x48b   : > { %v1558_v54 = vpop.f32.mrf.mxu1 }
 0x48d   : > { %v997_v55 = vpop.f32.mrf.mxu1 }
 0x48f   : > { %v1559_v56 = vpop.f32.mrf.mxu1 }
 0x491   : > { %v1107_v57 = vpop.f32.mrf.mxu1 }
 0x492   : > { %1122 = vrot.lane.b32.xlu0 %v1107_v57, %s1999_s16 }
 0x493   : > { %v1570_v58 = vpop.f32.mrf.mxu1 }
 0x495   : > { %v1110_v59 = vpop.f32.mrf.mxu1 }
 0x497   : > { %v1571_v0 = vpop.f32.mrf.mxu1 }
 0x4f4   : > { %v1115_v60 = vpop.permute.xlu0 %1114 }
 0x4f5   : > { %v1125_v62 = vsel %vm661_vm2, %v767_v43, %v1115_v60 }
 0x4fc   : > { %v1119_v61 = vpop.permute.xlu1 %1118 }
 0x4fd   : > { %v1127_v63 = vsel %vm1126_vm6, %v1125_v62, %v1119_v61 }
 0x504   : > { %v1123_v1 = vpop.permute.xlu0 %1122 }
 0x505   : > { %v1129_v2 = vsel %vm1128_vm7, %v1127_v63, %v1123_v1 }
 0x506   : > { %v1130_v3 = vpack.c.bf16 %v1129_v2, %v1129_v2 }
 0x508   : > { %1577 = vmatmul.mubr.msk.bf16.vlgmr.msra.gmra.mxu0 %vm539_vm1, %v1130_v3 }
 0x5c8   : > { %v1191_v6 = vpop.f32.mrf.mxu0 }
 0x5c9   : > { %v1192_v7 = vadd.f32 %v1469_v4, %v1191_v6 }
 0x5ca   : > { %v1578_v8 = vpop.f32.mrf.mxu0 }
 0x5cb   : > { %v1197_v9 = vadd.f32 %v1192_v7, %v2238_v5 }
 0x5cc   : > { %v1194_v10 = vpop.f32.mrf.mxu0 }
 0x5cd   : > { %v1198_v11 = vsel %vm539_vm1, %v1197_v9, 0.0 }
 0x5ce   : > { %1199 = vadd.xlane.f32.xlu1 %v1198_v11  ;;  %v1579_v12 = vpop.f32.mrf.mxu0 }
 0x657   : > { %v1200_v13 = vpop.xlane.xlu1 %1199 }
 0x658   : > { %v1202_v14 = vmul.f32 0.03125, %v1200_v13 }
 0x65a   : > { %v1203_v15 = vsub.f32 %v1197_v9, %v1202_v14 }
 0x65c   : > { %v1204_v16 = vmul.f32 %v1203_v15, %v1203_v15 }
 0x65e   : > { %v1205_v17 = vsel %vm539_vm1, %v1204_v16, 0.0 }
 0x65f   : > { %1206 = vadd.xlane.f32.xlu0 %v1205_v17 }
 0x660   : > { %1870 = shalt.err (!%p1867_p2)
}
 0x661   : > { %s1871_s12 = scalar_lea.hbm %s2340_s14, 256  ;;  %s1875_s16 = scalar_lea.hbm %s2426_s11, 512 }
 0x662   : > { %p1872_p4 = scmp.ne.s32.totalorder %s2340_s14, %s1871_s12  ;;  %p1876_p7 = scmp.lt.s32.totalorder %s2340_s14, %s2426_s11 }
 0x663   : > { %p1877_p6 = scmp.lt.s32.totalorder %s1875_s16, %s1871_s12 }
 0x664   : > { %p1873_p1 = pnand %p1872_p4, %p2160_p5 }
 0x665   : > { %p1878_p12 = por %p1877_p6, %p1876_p7 }
 0x666   : > { %p1874_p8 = pneg %p1873_p1 }
 0x668   : > { %p1879_p0 = pnand %p1878_p12, %p1874_p8 }
 0x66a   : > { %1882 = shalt.err (!%p1879_p0)
}
 0x66b   : > { %s2001_s17 = smov 64   ;;  %s2002_s9 = smov 4   ;;  %v1473_v22 = vld [vmem:[%s2423_s8] ss:$0 sm:$0xff] }
 0x66c   : > { %1597 = dma.vmem_to_hbm [thread:$0]  (%p2160_p5), %s2342_s29, 256, %s2340_s14, %s1235_s24, %s2001_s17, %s2001_s17, %s2002_s9  }
 0x66d   : > { %s2458_s15 = sld [smem:[#allocation27_spill]]  ;;  %s1477_s12 = sshll.u32 %s1971_s20, 7 }
 0x66e   : > { %s504_s6 = scalar_lea.vmem [#allocation11], %s2208_s13  ;;  %s2459_s24 = sld [smem:[#allocation28_spill]] }
 0x66f   : > { %s1249_s27 = sshll.u32 %s504_s6, 4  ;;  %s1230_s23 = scalar_lea.sflag [#allocation4], %s2205_s3  ;;  %s1250_s27 = int_to_ptr.vmem [resolvable:$true] %s1249_s27 }
 0x670   : > { %s1883_s25 = scalar_lea.vmem %s1250_s27, 128  ;;  %s2003_s17 = smov [#allocation11]  }
 0x671   : > { %p1884_p3 = scmp.ne.s32.totalorder %s1250_s27, %s1883_s25  ;;  %s1887_s9 = sshll.u32 %s2003_s17, 4  ;;  %s1888_s9 = int_to_ptr.vmem [resolvable:$false] %s1887_s9 }
 0x672   : > { %s1889_s20 = scalar_lea.vmem %s1888_s9, 256  ;;  %p1890_p9 = scmp.lt.s32.totalorder %s1250_s27, %s1888_s9 }
 0x673   : > { %v1474_v24 = vld [vmem:[%s2458_s15] ss:$0 sm:$0xff]  ;;  %p1885_p10 = pnand %p1884_p3, %p2160_p5  ;;  %p1891_p13 = scmp.lt.s32.totalorder %s1889_s20, %s1883_s25 }
 0x674   : > { %s1247_s16 = scalar_lea.hbm %s2459_s24, %s1477_s12 }
 0x675   : > { %p1886_p11 = pneg %p1885_p10  ;;  %p1892_p2 = por %p1891_p13, %p1890_p9 }
 0x677   : > { %p1893_p4 = pnand %p1892_p2, %p1886_p11 }
 0x6e8   : > { %v1207_v5 = vpop.xlane.xlu0 %1206 }
 0x6e9   : > { %v1208_v19 = vmul.f32 0.03125, %v1207_v5 }
 0x6eb   : > { %v1209_v20 = vadd.f32 1e-05, %v1208_v19 }
 0x6ed   : > { %1721 = vrsqrt.f32 %v1209_v20 }
 0x6fa   : > { %v1722_v21 = vpop.eup %1721 }
 0x6fb   : > { %v1211_v23 = vmul.f32 %v1722_v21, %v1203_v15 }
 0x6fd   : > { %v1219_v25 = vmul.f32 %v1473_v22, %v1211_v23 }
 0x6ff   : > { %v1227_v26 = vadd.f32 %v1474_v24, %v1219_v25 }
 0x701   : > { %1228 = vst.msk [vmem:[%s504_s6] sm:$0xff] %vm539_vm1, %v1227_v26 }
 0x702   : > { %1896 = shalt.err (!%p1893_p4)
}
 0x703   : > { %s1897_s13 = scalar_lea.hbm %s1247_s16, 128  ;;  %s1901_s2 = scalar_lea.hbm %s2459_s24, 256 }
 0x704   : > { %p1898_p1 = scmp.ne.s32.totalorder %s1247_s16, %s1897_s13  ;;  %p1902_p6 = scmp.lt.s32.totalorder %s1247_s16, %s2459_s24 }
 0x705   : > { %p1903_p12 = scmp.lt.s32.totalorder %s1901_s2, %s1897_s13 }
 0x706   : > { %p1899_p8 = pnand %p1898_p1, %p2160_p5 }
 0x707   : > { %p1904_p0 = por %p1903_p12, %p1902_p6 }
 0x708   : > { %p1900_p7 = pneg %p1899_p8 }
 0x70a   : > { %p1905_p3 = pnand %p1904_p0, %p1900_p7 }
 0x70c   : > { %1908 = shalt.err (!%p1905_p3)
}
 0x70d   : > { %1596 = dma.vmem_to_hbm [thread:$0]  (%p2160_p5), %s1250_s27, 128, %s1247_s16, %s1230_s23  }
 0x70e PF: > { %s2460_s15 = sld [smem:[#allocation20_spill]]  ;;  %p2463_p11 = scmp.ge.s32.totalorder %s1979_s22, 2 }
 0x70f   : > { %s2461_s12 = sld [smem:[#allocation21_spill]] }
 0x714   : > { %s1278_s6 = sand.u32 1, %s2460_s15  }
 0x715   : > { %p2462_p10 = scmp.ne.s32.totalorder %s2461_s12, 0  ;;  %s1279_s29 = scalar_lea.sflag [#allocation4], %s1278_s6 }
 0x717   : > { %p1618_p9 = pnand %p2463_p11, %p2462_p10 }
 0x719   : > { %p1619_p13 = pneg %p1618_p9 }
 0x71b   : > { %1950 = dma.done.wait (%p1619_p13), %s1279_s29, 128  }
 0x71c   : > { %1952 = vsyncadd (%p1619_p13), %s1279_s29, 4294967168  ;;  %s1288_s14 = scalar_lea.sflag [#allocation13], %s1278_s6 }
 0x71d   : > { %1954 = dma.done.wait (%p1619_p13), %s1288_s14, 256  }
 0x71e   : > { %1956 = vsyncadd (%p1619_p13), %s1288_s14, 4294967040  ;;  %s35_s22 = sadd.s32 1, %s1979_s22   ;;  %s2464_s30 = sld [smem:[#allocation22_spill]] }
 0x71f   : > { %p32_p2 = scmp.ge.s32.totalorder %s35_s22, 4   ;;  %s2465_s17 = smov %s1963_s18 }
 0x720   : > { %s2466_s18 = smov %s1967_s19  ;;  %s2467_s19 = smov %s2172_s28 }
 0x721   : > { %s2468_s20 = smov %s1975_s21  ;;  %34 = sbr.rel (!%p32_p2) target bundleno = 18 (0x12), region = 150 }
 0x724   : > { %s2469_s21 = smov %s2464_s30 }
 0x726   :  { %1293 = vsyncpa [#allocation3], 1 }
 0x727   :  { %1295 = vsyncpa [#allocation3 + $0x1], 1 }
 0x728   :  { %1296 = vsyncpa [#allocation6], 1 }
 0x729   :  { %1298 = vsyncpa [#allocation6 + $0x1], 1 }
 0x72a   :  { %1299 = vsyncpa [#allocation9], 1 }
 0x72b   :  { %1300 = vsyncpa [#allocation4], 1 }
 0x72c   :  { %1302 = vsyncpa [#allocation4 + $0x1], 1 }
 0x72d   :  { %1303 = vsyncpa [#allocation13], 1 }
 0x72e   :  { %1305 = vsyncpa [#allocation13 + $0x1], 1 }

</bundles_post_ra>
